<compile_context>
chip_gen: v7x
topology: tpu7x:2x2x1
jax: 0.10.0
libtpu: 0.0.40
codegen_flags: <defaults>
</compile_context>

<pallas_src>
import functools

import jax
import jax.numpy as jnp
from jax.experimental import pallas as pl
from jax.experimental.pallas import tpu as pltpu


def _round_up(v, m):
    return (v + m - 1) // m * m


# ----------------------------- Pallas kernel --------------------------------
def _fused_kernel(x_ref, w_ref, bias_ref, mask_ref, out_ref, pool_ref, *,
                  L, Woc, Hp, Wp):
    # x_ref:    (1, Hh*Woc, 4*C1) bf16  2x2 phase-split, phases packed on lanes
    # w_ref:    (4, 4*C1, C2b)    bf16  grouped conv weights (BN scale folded)
    # bias_ref: (1, C2b)          f32   folded BN bias
    # mask_ref: (L, 1)            f32   1.0 on real conv columns, 0.0 on pad cols
    # out_ref:  (1, Hp, Wp, C2b)        pooled output (lane-dense channels)
    # pool_ref: (L + 2*(Woc+1), C2b) f32 scratch for the fused max-pool
    C2b = out_ref.shape[-1]
    pad = Woc + 1

    # ---- conv 3x3 / stride 2: 4 accumulating MXU matmuls ----------------------
    # Taps sharing a flat-row offset are one matmul; phase selection is encoded
    # in which K rows of w_ref[g] are non-zero.
    acc = None
    for g, s in enumerate((0, 1, Woc, Woc + 1)):                  # static offsets
        lhs = x_ref[0, s:s + L, :]                                # (L, 4*C1) bf16
        part = jnp.dot(lhs, w_ref[g], preferred_element_type=jnp.float32)
        acc = part if acc is None else acc + part

    # ---- folded BN bias + ReLU; zero the padded (garbage) conv columns --------
    y = jnp.maximum(acc + bias_ref[...], 0.0) * mask_ref[...]     # (L, C2b) f32

    # ---- fused max-pool 3x3 / stride 2 / pad 1 (separable max) ----------------
    # Zero-pad the flat conv map by (Woc+1) rows on each side so every shifted
    # neighbor is a static slice; wrap-around column reads land on zeroed pad
    # columns, and ReLU >= 0 makes zero-padding equivalent to -inf padding.
    zeros = jnp.zeros((pad, C2b), jnp.float32)
    pool_ref[0:pad, :] = zeros
    pool_ref[pad + L:pad + L + pad, :] = zeros
    pool_ref[pad:pad + L, :] = y

    # vertical 3-max (column-aligned shifts by +-Woc)
    vmax = jnp.maximum(jnp.maximum(pool_ref[pad - Woc:pad - Woc + L, :], y),
                       pool_ref[pad + Woc:pad + Woc + L, :])
    pool_ref[pad:pad + L, :] = vmax
    # horizontal 3-max (shifts by +-1; wrap lands on masked / pad zeros)
    hmax = jnp.maximum(jnp.maximum(pool_ref[pad - 1:pad - 1 + L, :], vmax),
                       pool_ref[pad + 1:pad + 1 + L, :])

    # Dense "3x3 max at every conv pixel" map, then stride-2 subsample.
    pool_ref[0:L, :] = hmax
    for hp in range(Hp):
        row = pool_ref[pl.ds(2 * hp * Woc, Wp, stride=2), :]      # (Wp, C2b)
        out_ref[0, hp] = row.astype(out_ref.dtype)


# -------------------------------- wrapper ------------------------------------
def conv_bn_relu_maxpool(x, weight, gamma, beta, running_mean, running_var,
                         eps=1e-5):
    """x: (N, C1, H, W) f32; weight: (C2, C1, 3, 3). Returns (N, C2, Hp, Wp)."""
    N, C1, H, W = x.shape
    C2 = weight.shape[0]

    Ho = (H + 2 - 3) // 2 + 1
    Wo = (W + 2 - 3) // 2 + 1
    Hp = (Ho + 2 - 3) // 2 + 1
    Wp = (Wo + 2 - 3) // 2 + 1

    Woc = _round_up(Wo + 1, 16)      # computed conv width: >= Wo+1, sublane friendly
    Hh = Ho + 2                      # phase rows (extra halo rows of zeros)
    L = Ho * Woc
    C2p = _round_up(C2, 128)         # lane-dense output channels

    # ---- fold eval-mode BN: scale into weights, bias separate ----------------
    scale = gamma / jnp.sqrt(running_var + eps)                   # (C2,)
    bias = beta - running_mean * scale                            # (C2,)
    w_scaled = weight * scale[:, None, None, None]                # (C2, C1, 3, 3)

    # Grouped weights: group g = (dy//2)*2 + (dx//2) (flat-row offset),
    # K rows = phase p = (dy%2)*2 + (dx%2) times C1.
    wg = jnp.zeros((4, 4, C1, C2), jnp.float32)
    for dy in range(3):
        for dx in range(3):
            g = (dy // 2) * 2 + (dx // 2)
            p = (dy % 2) * 2 + (dx % 2)
            wg = wg.at[g, p].set(jnp.transpose(w_scaled[:, :, dy, dx]))  # (C1, C2)
    wg = wg.reshape(4, 4 * C1, C2)
    wg = jnp.pad(wg, ((0, 0), (0, 0), (0, C2p - C2))).astype(jnp.bfloat16)
    bias = jnp.pad(bias, (0, C2p - C2)).reshape(1, C2p).astype(jnp.float32)

    # ---- input: bf16, spatial pad, 2x2 stride-phase split packed on lanes ----
    xb = x.astype(jnp.bfloat16)
    Hpad, Wpad = 2 * Hh, 2 * Woc
    xp = jnp.pad(xb, ((0, 0), (0, 0), (1, Hpad - 1 - H), (1, Wpad - 1 - W)))
    x6 = xp.reshape(N, C1, Hh, 2, Woc, 2)                         # (N,C1,r,py,c,px)
    xm = jnp.transpose(x6, (0, 2, 4, 3, 5, 1))                    # (N,r,c,py,px,C1)
    xm = xm.reshape(N, Hh * Woc, 4 * C1)

    # mask for the padded conv output columns (wo >= Wo)
    col = jnp.arange(L, dtype=jnp.int32) % Woc
    mask = (col < Wo).astype(jnp.float32).reshape(L, 1)

    kernel = functools.partial(_fused_kernel, L=L, Woc=Woc, Hp=Hp, Wp=Wp)
    grid = (N, C2p // 128)

    out = pl.pallas_call(
        kernel,
        out_shape=jax.ShapeDtypeStruct((N, Hp, Wp, C2p), x.dtype),
        grid_spec=pltpu.PrefetchScalarGridSpec(
            num_scalar_prefetch=0,
            grid=grid,
            in_specs=[
                pl.BlockSpec((1, Hh * Woc, 4 * C1), lambda n, j: (n, 0, 0)),
                pl.BlockSpec((4, 4 * C1, 128), lambda n, j: (0, 0, j)),
                pl.BlockSpec((1, 128), lambda n, j: (0, j)),
                pl.BlockSpec((L, 1), lambda n, j: (0, 0)),
            ],
            out_specs=pl.BlockSpec((1, Hp, Wp, 128), lambda n, j: (n, 0, 0, j)),
            scratch_shapes=[pltpu.VMEM((L + 2 * (Woc + 1), 128), jnp.float32)],
        ),
        compiler_params=pltpu.CompilerParams(
            dimension_semantics=("parallel", "parallel"),
            vmem_limit_bytes=48 * 1024 * 1024,
        ),
    )(xm, wg, bias, mask)

    out = out[:, :, :, :C2]                                       # drop channel pad
    return jnp.transpose(out, (0, 3, 1, 2))                       # NHWC -> NCHW


# ------------------------------- reference -----------------------------------
def _reference(x, weight, gamma, beta, mean, var, eps=1e-5):
    y = jax.lax.conv_general_dilated(
        x, weight, window_strides=(2, 2), padding=[(1, 1), (1, 1)],
        dimension_numbers=("NCHW", "OIHW", "NCHW"))
    scale = gamma / jnp.sqrt(var + eps)
    y = y * scale[None, :, None, None] + (beta - mean * scale)[None, :, None, None]
    y = jnp.maximum(y, 0.0)
    y = jax.lax.reduce_window(
        y, -jnp.inf, jax.lax.max,
        window_dimensions=(1, 1, 3, 3), window_strides=(1, 1, 2, 2),
        padding=((0, 0), (0, 0), (1, 1), (1, 1)))
    return y


if __name__ == "__main__":
    key = jax.random.PRNGKey(0)
    kx, kw, kg, kb, km, kv = jax.random.split(key, 6)

    N, C1, C2, H, W = 2, 4, 8, 16, 16
    x = jax.random.normal(kx, (N, C1, H, W), dtype=jnp.float32)
    weight = jax.random.normal(kw, (C2, C1, 3, 3), dtype=jnp.float32) * 0.1
    gamma = jax.random.uniform(kg, (C2,), minval=0.5, maxval=1.5)
    beta = jax.random.normal(kb, (C2,)) * 0.1
    running_mean = jax.random.normal(km, (C2,)) * 0.1
    running_var = jax.random.uniform(kv, (C2,), minval=0.5, maxval=1.5)

    out = conv_bn_relu_maxpool(x, weight, gamma, beta, running_mean, running_var)
    out = jax.block_until_ready(out)

    ref = _reference(x, weight, gamma, beta, running_mean, running_var)
    assert out.shape == ref.shape == (N, C2, 4, 4), (out.shape, ref.shape)
    max_err = float(jnp.max(jnp.abs(out - ref)))
    assert jnp.allclose(out, ref, atol=3e-2, rtol=3e-2), max_err

    print("KERNEL_OK")
</pallas_src>

<mosaic_0001>
module attributes {stable_mosaic.version = 11 : i64} {
  func.func @_fused_kernel(%arg0: i32, %arg1: i32, %arg2: memref<1x160x16xbf16, #tpu.memory_space<vmem>>, %arg3: memref<4x16x128xbf16, #tpu.memory_space<vmem>>, %arg4: memref<1x128xf32, #tpu.memory_space<vmem>>, %arg5: memref<128x1xf32, #tpu.memory_space<vmem>>, %arg6: memref<1x4x4x128xf32, #tpu.memory_space<vmem>>, %arg7: memref<162x128xf32, #tpu.memory_space<vmem>>) attributes {dimension_semantics = [#tpu.dimension_semantics<parallel>, #tpu.dimension_semantics<parallel>], iteration_bounds = array<i64: 2, 1>, scalar_prefetch = 0 : i64, scratch_operands = 1 : i64, tpu.core_type = #tpu.core_type<tc>, window_params = [{transform_indices = @transform_0, window_bounds = array<i64: 1, 160, 16>}, {transform_indices = @transform_1, window_bounds = array<i64: 4, 16, 128>}, {transform_indices = @transform_2, window_bounds = array<i64: 1, 128>}, {pipeline_mode = #tpu.pipeline_mode<synchronous>, transform_indices = @transform_3, window_bounds = array<i64: 128, 1>}, {transform_indices = @transform_4, window_bounds = array<i64: 1, 4, 4, 128>}]} {
    %c0 = arith.constant 0 : index
    %c0_0 = arith.constant 0 : index
    %c0_1 = arith.constant 0 : index
    %0 = vector.load %arg2[%c0, %c0_0, %c0_1] : memref<1x160x16xbf16, #tpu.memory_space<vmem>>, vector<1x128x16xbf16>
    %1 = vector.shape_cast %0 : vector<1x128x16xbf16> to vector<128x16xbf16>
    %c0_2 = arith.constant 0 : index
    %c0_3 = arith.constant 0 : index
    %c0_4 = arith.constant 0 : index
    %2 = vector.load %arg3[%c0_2, %c0_3, %c0_4] : memref<4x16x128xbf16, #tpu.memory_space<vmem>>, vector<1x16x128xbf16>
    %3 = vector.shape_cast %2 : vector<1x16x128xbf16> to vector<16x128xbf16>
    %cst = arith.constant dense<0.000000e+00> : vector<128x128xf32>
    %4 = tpu.matmul %1, %3, %cst {dimension_numbers = #tpu.dot_dimension_numbers<[1], [0], [0], [1], [0, 0, 1, 1], [], []>} : vector<128x16xbf16>, vector<16x128xbf16>, vector<128x128xf32> -> vector<128x128xf32>
    %c0_5 = arith.constant 0 : index
    %c1 = arith.constant 1 : index
    %c0_6 = arith.constant 0 : index
    %5 = vector.load %arg2[%c0_5, %c1, %c0_6] : memref<1x160x16xbf16, #tpu.memory_space<vmem>>, vector<1x128x16xbf16>
    %6 = vector.shape_cast %5 : vector<1x128x16xbf16> to vector<128x16xbf16>
    %c1_7 = arith.constant 1 : index
    %c0_8 = arith.constant 0 : index
    %c0_9 = arith.constant 0 : index
    %7 = vector.load %arg3[%c1_7, %c0_8, %c0_9] : memref<4x16x128xbf16, #tpu.memory_space<vmem>>, vector<1x16x128xbf16>
    %8 = vector.shape_cast %7 : vector<1x16x128xbf16> to vector<16x128xbf16>
    %cst_10 = arith.constant dense<0.000000e+00> : vector<128x128xf32>
    %9 = tpu.matmul %6, %8, %cst_10 {dimension_numbers = #tpu.dot_dimension_numbers<[1], [0], [0], [1], [0, 0, 1, 1], [], []>} : vector<128x16xbf16>, vector<16x128xbf16>, vector<128x128xf32> -> vector<128x128xf32>
    %10 = arith.addf %4, %9 : vector<128x128xf32>
    %c0_11 = arith.constant 0 : index
    %c16 = arith.constant 16 : index
    %c0_12 = arith.constant 0 : index
    %11 = vector.load %arg2[%c0_11, %c16, %c0_12] : memref<1x160x16xbf16, #tpu.memory_space<vmem>>, vector<1x128x16xbf16>
    %12 = vector.shape_cast %11 : vector<1x128x16xbf16> to vector<128x16xbf16>
    %c2 = arith.constant 2 : index
    %c0_13 = arith.constant 0 : index
    %c0_14 = arith.constant 0 : index
    %13 = vector.load %arg3[%c2, %c0_13, %c0_14] : memref<4x16x128xbf16, #tpu.memory_space<vmem>>, vector<1x16x128xbf16>
    %14 = vector.shape_cast %13 : vector<1x16x128xbf16> to vector<16x128xbf16>
    %cst_15 = arith.constant dense<0.000000e+00> : vector<128x128xf32>
    %15 = tpu.matmul %12, %14, %cst_15 {dimension_numbers = #tpu.dot_dimension_numbers<[1], [0], [0], [1], [0, 0, 1, 1], [], []>} : vector<128x16xbf16>, vector<16x128xbf16>, vector<128x128xf32> -> vector<128x128xf32>
    %16 = arith.addf %10, %15 : vector<128x128xf32>
    %c0_16 = arith.constant 0 : index
    %c17 = arith.constant 17 : index
    %c0_17 = arith.constant 0 : index
    %17 = vector.load %arg2[%c0_16, %c17, %c0_17] : memref<1x160x16xbf16, #tpu.memory_space<vmem>>, vector<1x128x16xbf16>
    %18 = vector.shape_cast %17 : vector<1x128x16xbf16> to vector<128x16xbf16>
    %c3 = arith.constant 3 : index
    %c0_18 = arith.constant 0 : index
    %c0_19 = arith.constant 0 : index
    %19 = vector.load %arg3[%c3, %c0_18, %c0_19] : memref<4x16x128xbf16, #tpu.memory_space<vmem>>, vector<1x16x128xbf16>
    %20 = vector.shape_cast %19 : vector<1x16x128xbf16> to vector<16x128xbf16>
    %cst_20 = arith.constant dense<0.000000e+00> : vector<128x128xf32>
    %21 = tpu.matmul %18, %20, %cst_20 {dimension_numbers = #tpu.dot_dimension_numbers<[1], [0], [0], [1], [0, 0, 1, 1], [], []>} : vector<128x16xbf16>, vector<16x128xbf16>, vector<128x128xf32> -> vector<128x128xf32>
    %22 = arith.addf %16, %21 : vector<128x128xf32>
    %c0_21 = arith.constant 0 : index
    %c0_22 = arith.constant 0 : index
    %23 = vector.load %arg4[%c0_21, %c0_22] : memref<1x128xf32, #tpu.memory_space<vmem>>, vector<1x128xf32>
    %24 = vector.broadcast %23 : vector<1x128xf32> to vector<128x128xf32>
    %25 = arith.addf %22, %24 : vector<128x128xf32>
    %cst_23 = arith.constant 0.000000e+00 : f32
    %26 = vector.broadcast %cst_23 : f32 to vector<128x128xf32>
    %27 = arith.maximumf %25, %26 : vector<128x128xf32>
    %c0_24 = arith.constant 0 : index
    %c0_25 = arith.constant 0 : index
    %28 = vector.load %arg5[%c0_24, %c0_25] : memref<128x1xf32, #tpu.memory_space<vmem>>, vector<128x1xf32>
    %29 = vector.broadcast %28 : vector<128x1xf32> to vector<128x128xf32>
    %30 = arith.mulf %27, %29 : vector<128x128xf32>
    %cst_26 = arith.constant 0.000000e+00 : f32
    %31 = vector.broadcast %cst_26 : f32 to vector<17x128xf32>
    %c0_27 = arith.constant 0 : index
    %c0_28 = arith.constant 0 : index
    %32 = vector.load %arg7[%c0_27, %c0_28] : memref<162x128xf32, #tpu.memory_space<vmem>>, vector<17x128xf32>
    tpu.vector_store %arg7[%c0_27, %c0_28], %31 {strides = array<i32>} : memref<162x128xf32, #tpu.memory_space<vmem>>, vector<17x128xf32>,
    %c145 = arith.constant 145 : index
    %c0_29 = arith.constant 0 : index
    %33 = vector.load %arg7[%c145, %c0_29] : memref<162x128xf32, #tpu.memory_space<vmem>>, vector<17x128xf32>
    tpu.vector_store %arg7[%c145, %c0_29], %31 {strides = array<i32>} : memref<162x128xf32, #tpu.memory_space<vmem>>, vector<17x128xf32>,
    %c17_30 = arith.constant 17 : index
    %c0_31 = arith.constant 0 : index
    %34 = vector.load %arg7[%c17_30, %c0_31] : memref<162x128xf32, #tpu.memory_space<vmem>>, vector<128x128xf32>
    tpu.vector_store %arg7[%c17_30, %c0_31], %30 {strides = array<i32>} : memref<162x128xf32, #tpu.memory_space<vmem>>, vector<128x128xf32>,
    %c1_32 = arith.constant 1 : index
    %c0_33 = arith.constant 0 : index
    %35 = vector.load %arg7[%c1_32, %c0_33] : memref<162x128xf32, #tpu.memory_space<vmem>>, vector<128x128xf32>
    %36 = arith.maximumf %35, %30 : vector<128x128xf32>
    %c33 = arith.constant 33 : index
    %c0_34 = arith.constant 0 : index
    %37 = vector.load %arg7[%c33, %c0_34] : memref<162x128xf32, #tpu.memory_space<vmem>>, vector<128x128xf32>
    %38 = arith.maximumf %36, %37 : vector<128x128xf32>
    %c17_35 = arith.constant 17 : index
    %c0_36 = arith.constant 0 : index
    %39 = vector.load %arg7[%c17_35, %c0_36] : memref<162x128xf32, #tpu.memory_space<vmem>>, vector<128x128xf32>
    tpu.vector_store %arg7[%c17_35, %c0_36], %38 {strides = array<i32>} : memref<162x128xf32, #tpu.memory_space<vmem>>, vector<128x128xf32>,
    %c16_37 = arith.constant 16 : index
    %c0_38 = arith.constant 0 : index
    %40 = vector.load %arg7[%c16_37, %c0_38] : memref<162x128xf32, #tpu.memory_space<vmem>>, vector<128x128xf32>
    %41 = arith.maximumf %40, %38 : vector<128x128xf32>
    %c18 = arith.constant 18 : index
    %c0_39 = arith.constant 0 : index
    %42 = vector.load %arg7[%c18, %c0_39] : memref<162x128xf32, #tpu.memory_space<vmem>>, vector<128x128xf32>
    %43 = arith.maximumf %41, %42 : vector<128x128xf32>
    %c0_40 = arith.constant 0 : index
    %c0_41 = arith.constant 0 : index
    %44 = vector.load %arg7[%c0_40, %c0_41] : memref<162x128xf32, #tpu.memory_space<vmem>>, vector<128x128xf32>
    tpu.vector_store %arg7[%c0_40, %c0_41], %43 {strides = array<i32>} : memref<162x128xf32, #tpu.memory_space<vmem>>, vector<128x128xf32>,
    %c0_42 = arith.constant 0 : index
    %c0_43 = arith.constant 0 : index
    %45 = tpu.strided_load %arg7[%c0_42, %c0_43] {strides = array<i32: 2, 1>} : memref<162x128xf32, #tpu.memory_space<vmem>>, vector<4x128xf32>
    %c0_44 = arith.constant 0 : index
    %c0_45 = arith.constant 0 : index
    %c0_46 = arith.constant 0 : index
    %c0_47 = arith.constant 0 : index
    %46 = vector.load %arg6[%c0_44, %c0_45, %c0_46, %c0_47] : memref<1x4x4x128xf32, #tpu.memory_space<vmem>>, vector<1x1x4x128xf32>
    %47 = vector.shape_cast %46 : vector<1x1x4x128xf32> to vector<4x128xf32>
    %48 = vector.shape_cast %45 : vector<4x128xf32> to vector<1x1x4x128xf32>
    tpu.vector_store %arg6[%c0_44, %c0_45, %c0_46, %c0_47], %48 {strides = array<i32>} : memref<1x4x4x128xf32, #tpu.memory_space<vmem>>, vector<1x1x4x128xf32>,
    %c32 = arith.constant 32 : index
    %c0_48 = arith.constant 0 : index
    %49 = tpu.strided_load %arg7[%c32, %c0_48] {strides = array<i32: 2, 1>} : memref<162x128xf32, #tpu.memory_space<vmem>>, vector<4x128xf32>
    %c0_49 = arith.constant 0 : index
    %c1_50 = arith.constant 1 : index
    %c0_51 = arith.constant 0 : index
    %c0_52 = arith.constant 0 : index
    %50 = vector.load %arg6[%c0_49, %c1_50, %c0_51, %c0_52] : memref<1x4x4x128xf32, #tpu.memory_space<vmem>>, vector<1x1x4x128xf32>
    %51 = vector.shape_cast %50 : vector<1x1x4x128xf32> to vector<4x128xf32>
    %52 = vector.shape_cast %49 : vector<4x128xf32> to vector<1x1x4x128xf32>
    tpu.vector_store %arg6[%c0_49, %c1_50, %c0_51, %c0_52], %52 {strides = array<i32>} : memref<1x4x4x128xf32, #tpu.memory_space<vmem>>, vector<1x1x4x128xf32>,
    %c64 = arith.constant 64 : index
    %c0_53 = arith.constant 0 : index
    %53 = tpu.strided_load %arg7[%c64, %c0_53] {strides = array<i32: 2, 1>} : memref<162x128xf32, #tpu.memory_space<vmem>>, vector<4x128xf32>
    %c0_54 = arith.constant 0 : index
    %c2_55 = arith.constant 2 : index
    %c0_56 = arith.constant 0 : index
    %c0_57 = arith.constant 0 : index
    %54 = vector.load %arg6[%c0_54, %c2_55, %c0_56, %c0_57] : memref<1x4x4x128xf32, #tpu.memory_space<vmem>>, vector<1x1x4x128xf32>
    %55 = vector.shape_cast %54 : vector<1x1x4x128xf32> to vector<4x128xf32>
    %56 = vector.shape_cast %53 : vector<4x128xf32> to vector<1x1x4x128xf32>
    tpu.vector_store %arg6[%c0_54, %c2_55, %c0_56, %c0_57], %56 {strides = array<i32>} : memref<1x4x4x128xf32, #tpu.memory_space<vmem>>, vector<1x1x4x128xf32>,
    %c96 = arith.constant 96 : index
    %c0_58 = arith.constant 0 : index
    %57 = tpu.strided_load %arg7[%c96, %c0_58] {strides = array<i32: 2, 1>} : memref<162x128xf32, #tpu.memory_space<vmem>>, vector<4x128xf32>
    %c0_59 = arith.constant 0 : index
    %c3_60 = arith.constant 3 : index
    %c0_61 = arith.constant 0 : index
    %c0_62 = arith.constant 0 : index
    %58 = vector.load %arg6[%c0_59, %c3_60, %c0_61, %c0_62] : memref<1x4x4x128xf32, #tpu.memory_space<vmem>>, vector<1x1x4x128xf32>
    %59 = vector.shape_cast %58 : vector<1x1x4x128xf32> to vector<4x128xf32>
    %60 = vector.shape_cast %57 : vector<4x128xf32> to vector<1x1x4x128xf32>
    tpu.vector_store %arg6[%c0_59, %c3_60, %c0_61, %c0_62], %60 {strides = array<i32>} : memref<1x4x4x128xf32, #tpu.memory_space<vmem>>, vector<1x1x4x128xf32>,
    return
  }
  func.func @transform_0(%arg0: i32, %arg1: i32) -> (i32, i32, i32) {
    %c0_i32 = arith.constant 0 : i32
    %c0_i32_0 = arith.constant 0 : i32
    %c0_i32_1 = arith.constant 0 : i32
    return %arg0, %c0_i32, %c0_i32_0 : i32, i32, i32
  }
  func.func @transform_1(%arg0: i32, %arg1: i32) -> (i32, i32, i32) {
    %c0_i32 = arith.constant 0 : i32
    %c0_i32_0 = arith.constant 0 : i32
    %c0_i32_1 = arith.constant 0 : i32
    return %c0_i32, %c0_i32_0, %arg1 : i32, i32, i32
  }
  func.func @transform_2(%arg0: i32, %arg1: i32) -> (i32, i32) {
    %c0_i32 = arith.constant 0 : i32
    %c0_i32_0 = arith.constant 0 : i32
    return %c0_i32, %arg1 : i32, i32
  }
  func.func @transform_3(%arg0: i32, %arg1: i32) -> (i32, i32) {
    %c0_i32 = arith.constant 0 : i32
    %c0_i32_0 = arith.constant 0 : i32
    %c0_i32_1 = arith.constant 0 : i32
    return %c0_i32, %c0_i32_0 : i32, i32
  }
  func.func @transform_4(%arg0: i32, %arg1: i32) -> (i32, i32, i32, i32) {
    %c0_i32 = arith.constant 0 : i32
    %c0_i32_0 = arith.constant 0 : i32
    %c0_i32_1 = arith.constant 0 : i32
    return %arg0, %c0_i32, %c0_i32_0, %arg1 : i32, i32, i32, i32
  }
}

</mosaic_0001>

<bundles_post_ra>
// kernel: tpu_custom_call.1
= control target key start
LH: loop header
LB: loop body
LE: loop exit
PB: predicated region body
PF: predicated region fallthrough
CT: control target
= control target key end

     0   :  { %9 = vsyncpa [#allocation4], 0  ;;  %s2413_s0 = inlined_call_operand.vmem [shape: bf16[2,160,16], index: 0, kind: input, shape index: {}]   ;;  %s2414_s1 = inlined_call_operand.vmem [shape: bf16[4,16,128], index: 1, kind: input, shape index: {}]   ;;  %s2415_s2 = inlined_call_operand.vmem [shape: f32[1,128], index: 2, kind: input, shape index: {}]   ;;  %s2416_s3 = inlined_call_operand.vmem [shape: f32[128,1], index: 3, kind: input, shape index: {}]   ;;  %s2417_s4 = inlined_call_operand.hbm [shape: f32[2,4,4,128], index: 4, kind: output, shape index: {}]  }
   0x1   :  { %11 = vsyncpa [#allocation4 + $0x1], 0  ;;  %s1993_s15 = smov 0   ;;  %s1995_s16 = smov 0  }
   0x2   :  { %s1997_s17 = smov 0   ;;  %s1999_s18 = smov 0  }
   0x3   :  { %s2001_s19 = smov 0   ;;  %s2003_s20 = smov 0  }
   0x4 LB: > { %s1548_s21 = sadd.s32 4294967295, %s1961_s20   ;;  %s1549_s22 = sadd.s32 4294967294, %s1961_s20   ;;  %s1961_s20 = sphi %s2003_s20, %s17_s20   ;;  %s1957_s19 = sphi %s2001_s19, %s2424_s19   ;;  %s1953_s18 = sphi %s1999_s18, %s2423_s18   ;;  %s1949_s17 = sphi %s1997_s17, %s2422_s17   ;;  %s1945_s16 = sphi %s1995_s16, %s2421_s16   ;;  %s1941_s15 = sphi %s1993_s15, %s2420_s15  }
   0x5   : > { %s29_s23 = sadd.s32 1, %s1957_s19  ;;  %s137_s24 = sadd.s32 1, %s1949_s17 }
   0x6   : > { %p31_p0 = scmp.ge.s32.totalorder %s29_s23, 2  ;;  %p147_p1 = scmp.ne.s32.totalorder %s1949_s17, %s1945_s16 }
   0x7   : > { %p148_p2 = scmp.eq.s32.totalorder %s1548_s21, 1  ;;  %p153_p3 = scmp.ne.s32.totalorder %s1945_s16, %s1941_s15 }
   0x8   : > { %s2426_s23 = smov (%p31_p0, %s29_s23), 0  ;;  %p154_p5 = scmp.eq.s32.totalorder %s1549_s22, 1 }
   0x9   : > { %p2033_p4 = por %p148_p2, %p147_p1  ;;  %s132_s26 = ssub.s32 %s1957_s19, %s2426_s23 }
   0xa   : > { %p1554_p6 = scmp.ge.s32.totalorder %s1961_s20, 1  ;;  %p135_p7 = scmp.eq.s32.totalorder %s132_s26, 0 }
   0xb   : > { %p2040_p8 = por %p154_p5, %p153_p3  ;;  %p196_p9 = scmp.lt.s32.totalorder %s1961_s20, 3 }
   0xc   : > { %s2046_s28 = scalar_select %p135_p7, %s1949_s17, %s137_s24  }
   0xd   : > { %p197_p10 = pnand %p1554_p6, %p196_p9 }
   0xe   : > { %v1853_v0 = vld [vmem:[%s2414_s1 + $0x10] sm:$0xff] (!%p197_p10)   ;;  %p229_p11 = scmp.lt.s32.totalorder (!%p197_p10), %s1953_s18, 1  ;;  %v1856_v1 = vld [vmem:[%s2414_s1 + $0x8] sm:$0xff] (!%p197_p10)   ;;  %v2059_v2 = vld [vmem:[%s2414_s1] sm:$0xff] (!%p197_p10)   ;;  %v1963_v6 = vmov (!%p197_p10), 0   ;;  %vm382_vm0 = vcmask (!%p197_p10), 130048  }
   0xf   : > { %200 = sbr.rel (%p197_p10) target bundleno = 354 (0x162), region = 36  ;;  %1707 = vmatprep.subr.bf16.mxu0 (!%p197_p10), %v1853_v0  ;;  %1671 = vmatprep.subr.bf16.mxu1 (!%p197_p10), %v1856_v1  ;;  %v1860_v3 = vld [vmem:[%s2414_s1 + $0x18] sm:$0xff] (!%p197_p10)   ;;  %v1143_v4 = vld [vmem:[%s2416_s3 + $0x28] sm:$0xff] (!%p197_p10)  ;;  %v1144_v7 = vld [vmem:[%s2416_s3 + $0x30] sm:$0xff] (!%p197_p10)  ;;  %vm307_vm1 = vsmask.f32 (!%p197_p10), 7424 }
  0x10   : > { %1708 = vmatpush3.bf16.msra.mxu0 (!%p197_p10), %v1853_v0  ;;  %1672 = vmatpush3.bf16.msra.mxu1 (!%p197_p10), %v1856_v1  ;;  %v1139_v5 = vld [vmem:[%s2416_s3 + $0x8] sm:$0xff] (!%p197_p10)  ;;  %v1140_v9 = vld [vmem:[%s2416_s3 + $0x10] sm:$0xff] (!%p197_p10)  ;;  %v1145_v28 = vld [vmem:[%s2416_s3 + $0x38] sm:$0xff] (!%p197_p10)  ;;  %s226_s26 = sand.u32 (!%p197_p10), 1, %s1945_s16   ;;  %s1634_s6 = sshll.u32 (!%p197_p10), %s1953_s18, 8 }
  0x11   : > { %1689 = vmatprep.subr.bf16.mxu1 (!%p197_p10), %v2059_v2  ;;  %1852 = vset.pattern.permute.xlu1 (!%p197_p10), %v1963_v6  ;;  %v1148_v13 = vld [vmem:[%s2416_s3 + $0x50] sm:$0xff] (!%p197_p10)  ;;  %v1147_v15 = vld [vmem:[%s2416_s3 + $0x48] sm:$0xff] (!%p197_p10)  ;;  %v1141_v41 = vld [vmem:[%s2416_s3 + $0x18] sm:$0xff] (!%p197_p10)  ;;  %s2323_s30 = sshll.u32 (!%p197_p10), %s226_s26, 4  ;;  %s2367_s11 = scalar_lea.sflag (!%p197_p10), [#allocation4], %s226_s26 }
  0x12   : > { %1725 = vmatprep.subr.bf16.mxu0 (!%p197_p10), %v1860_v3  ;;  %1851 = vset.pattern.permute.xlu0 (!%p197_p10), %v1963_v6  ;;  %s2344_s5 = scalar_lea.vmem (!%p197_p10), [#allocation3], %s2323_s30 }
  0x13   : > { %1181 = vperm.xlu1 (!%p197_p10), %1852, %v1143_v4   ;;  %1161 = vperm.xlu0 (!%p197_p10), %1851, %v1139_v5  }
  0x16   : > { %s230_s7 = scalar_select %p229_p11, %s1953_s18, 1 }
  0x17   : > { %1186 = vperm.xlu1 %1852, %v1144_v7   ;;  %1166 = vperm.xlu0 %1851, %v1140_v9   ;;  %s1965_s18 = smov [#allocation3]  }
  0x18   : > { %s1791_s10 = smul.u32 80, %s230_s7  ;;  %s1449_s7 = sshll.u32 %s2344_s5, 4  ;;  %s2362_s7 = int_to_ptr.vmem [resolvable:$true] %s1449_s7 }
  0x19   : > { %s1883_s12 = scalar_lea.vmem %s2362_s7, 256  ;;  %s1887_s13 = sshll.u32 %s1965_s18, 4  ;;  %s1888_s13 = int_to_ptr.vmem [resolvable:$false] %s1887_s13 }
  0x1a   : > { %s2074_s29 = scalar_lea.vmem %s2413_s0, %s1791_s10  ;;  %s2360_s10 = scalar_lea.hbm %s2417_s4, %s1634_s6 }
  0x1b   : > { %v1854_v8 = vld [vmem:[%s2074_s29 + $0x8] sm:$0xff]   ;;  %v1855_v10 = vld [vmem:[%s2074_s29 + $0x10] sm:$0xff]   ;;  %v2087_v11 = vld [vmem:[%s2074_s29] sm:$0xff]   ;;  %1206 = vperm.xlu1 %1852, %v1148_v13   ;;  %1201 = vperm.xlu0 %1851, %v1147_v15   ;;  %p1884_p12 = scmp.ne.s32.totalorder %s2362_s7, %s1883_s12  ;;  %s1889_s14 = scalar_lea.vmem %s1888_s13, 512 }
  0x1c   : > { %1709 = vmatprep.mubr.msk.bf16.mxu0 %vm382_vm0, %v1854_v8  ;;  %v2090_v12 = vld [vmem:[%s2074_s29 + $0x8] sm:$0xff]   ;;  %v2096_v14 = vld [vmem:[%s2074_s29 + $0x10] sm:$0xff]   ;;  %v309_v16 = vshrl.u32 %v2087_v11, 16  ;;  %v311_v17 = vshll.u32 %v2087_v11, 16  ;;  %v1862_v21 = vld [vmem:[%s2074_s29 + $0x18] sm:$0xff]   ;;  %p1890_p1 = scmp.lt.s32.totalorder %s2362_s7, %s1888_s13  ;;  %p1891_p2 = scmp.lt.s32.totalorder %s1889_s14, %s1883_s12 }
  0x1d   : > { %1710 = vmatmul.mubr.msk.bf16.vlgmr.msra.gmra.mrb[0].mxu0 %vm382_vm0, %v1855_v10  ;;  %v316_v18 = vshll.u32 %v2090_v12, 16  ;;  %v320_v19 = vshrl.u32 %v2090_v12, 16  ;;  %v324_v20 = vshll.u32 %v2096_v14, 16  ;;  %v1863_v24 = vld [vmem:[%s2074_s29 + $0x20] sm:$0xff]   ;;  %v2109_v25 = vld [vmem:[%s2074_s29 + $0x18] sm:$0xff]   ;;  %v328_v27 = vshrl.u32 %v2096_v14, 16  ;;  %p1885_p13 = pnand %p1884_p12, %p2033_p4 }
  0x1e   : > { %1726 = vmatpush3.bf16.msra.mxu0 %v1860_v3  ;;  %v313_v22 = vrot.slane %v311_v17, 1  ;;  %1713 = vmatprep.mubr.msk.bf16.mxu0 %vm382_vm0, %v1862_v21  ;;  %v332_v31 = vshll.u32 %v2109_v25, 16  ;;  %v2118_v32 = vld [vmem:[%s2074_s29 + $0x20] sm:$0xff]   ;;  %v336_v34 = vshrl.u32 %v2109_v25, 16  ;;  %v1866_v35 = vld [vmem:[%s2074_s29 + $0x28] sm:$0xff]   ;;  %v2140_v46 = vld [vmem:[%s2074_s29 + $0x30] sm:$0xff]   ;;  %p1892_p3 = por %p1891_p2, %p1890_p1 }
  0x1f   : > { %v318_v23 = vrot.slane %v316_v18, 1  ;;  %v326_v26 = vrot.slane %v324_v20, 1  ;;  %v340_v39 = vshll.u32 %v2118_v32, 16  ;;  %v344_v40 = vshrl.u32 %v2118_v32, 16  ;;  %v2135_v44 = vld [vmem:[%s2074_s29 + $0x28] sm:$0xff]   ;;  %1191 = vperm.xlu1 %1852, %v1145_v28   ;;  %v1867_v47 = vld [vmem:[%s2074_s29 + $0x30] sm:$0xff]   ;;  %1171 = vperm.xlu0 %1851, %v1141_v41   ;;  %p1886_p0 = pneg %p1885_p13 }
  0x20   : > { %v314_v29 = vor.u32 %v313_v22, %v309_v16  ;;  %v334_v38 = vrot.slane %v332_v31, 1  ;;  %v348_v49 = vshll.u32 %v2135_v44, 16  ;;  %v1870_v50 = vld [vmem:[%s2074_s29 + $0x38] sm:$0xff]   ;;  %v356_v51 = vshll.u32 %v2140_v46, 16  ;;  %v1874_v61 = vld [vmem:[%s2074_s29 + $0x8] sm:$0xff]   ;;  %v1875_v62 = vld [vmem:[%s2074_s29 + $0x10] sm:$0xff]  }
  0x21   : > { %v322_v30 = vor.u32 %v320_v19, %v318_v23  ;;  %v330_v33 = vor.u32 %v328_v27, %v326_v26  ;;  %v342_v43 = vrot.slane %v340_v39, 1  ;;  %v2147_v52 = vld [vmem:[%s2074_s29 + $0x38] sm:$0xff]   ;;  %v352_v55 = vshrl.u32 %v2135_v44, 16  ;;  %v1873_v60 = vld [vmem:[%s2074_s29 + $0x40] ss:$0 sps:$4 sm:$0x11]   ;;  %p1893_p5 = pnand %p1892_p3, %p1886_p0 }
  0x22   : > { %v319_v36 = vsel %vm307_vm1, %v314_v29, %v318_v23  ;;  %v338_v45 = vor.u32 %v336_v34, %v334_v38  ;;  %v350_v53 = vrot.slane %v348_v49, 1  ;;  %v360_v56 = vshrl.u32 %v2140_v46, 16  ;;  %v1876_v63 = vld [vmem:[%s2074_s29 + $0x18] sm:$0xff]   ;;  %v1871_v3 = vld [vmem:[%s2074_s29 + $0x40] sm:$0xff]   ;;  %v1878_v23 = vld [vmem:[%s2074_s29 + $0x28] sm:$0xff]  }
  0x23   : > { %v327_v37 = vsel %vm307_vm1, %v322_v30, %v326_v26  ;;  %1673 = vmatprep.mubr.msk.bf16.mxu1 %vm382_vm0, %v319_v36  ;;  %v335_v42 = vsel %vm307_vm1, %v330_v33, %v334_v38  ;;  %v346_v48 = vor.u32 %v344_v40, %v342_v43  ;;  %v364_v57 = vshll.u32 %v2147_v52, 16  ;;  %v1877_v8 = vld [vmem:[%s2074_s29 + $0x20] sm:$0xff]   ;;  %v1879_v26 = vld [vmem:[%s2074_s29 + $0x30] sm:$0xff]   ;;  %v1151_v30 = vld [vmem:[%s2416_s3 + $0x68] sm:$0xff] }
  0x24   : > { %1674 = vmatmul.mubr.msk.bf16.vlgmr.msra.gmra.mrb[0].mxu1 %vm382_vm0, %v327_v37  ;;  %v343_v54 = vsel %vm307_vm1, %v338_v45, %v342_v43  ;;  %v358_v59 = vrot.slane %v356_v51, 1  ;;  %v354_v0 = vor.u32 %v352_v55, %v350_v53  ;;  %v889_v4 = vshrl.u32 %v1874_v61, 16  ;;  %v1149_v34 = vld [vmem:[%s2416_s3 + $0x58] sm:$0xff]  ;;  %1221 = vperm.xlu1 %1852, %v1151_v30   ;;  %v1152_v38 = vld [vmem:[%s2416_s3 + $0x70] sm:$0xff]  ;;  %v1142_v49 = vld [vmem:[%s2416_s3 + $0x20] sm:$0xff] }
  0x25   : > { %1714 = vmatmul.mubr.msk.bf16.gmra.mrb[4].mxu0 %vm382_vm0, %v1863_v24  ;;  %1690 = vmatpush3.bf16.msra.mxu1 %v2059_v2  ;;  %v351_v58 = vsel %vm307_vm1, %v346_v48, %v350_v53  ;;  %v366_v2 = vrot.slane %v364_v57, 1  ;;  %v891_v5 = vshll.u32 %v1874_v61, 16  ;;  %v896_v6 = vshll.u32 %v1875_v62, 16  ;;  %v1881_v53 = vld [vmem:[%s2074_s29 + $0x40] sm:$0xff]  }
  0x26   : > { %1717 = vmatprep.mubr.msk.bf16.mxu0 %vm382_vm0, %v1866_v35  ;;  %1677 = vmatprep.mubr.msk.bf16.mxu1 %vm382_vm0, %v335_v42  ;;  %v362_v1 = vor.u32 %v360_v56, %v358_v59  ;;  %v904_v7 = vshll.u32 %v1876_v63, 16  ;;  %v900_v9 = vshrl.u32 %v1875_v62, 16  ;;  %v908_v15 = vshrl.u32 %v1876_v63, 16  ;;  %v1138_v42 = vld [vmem:[%s2416_s3] sm:$0xff]  ;;  %v1153_v62 = vld [vmem:[%s2416_s3 + $0x78] sm:$0xff] }
  0x27   : > { %v893_v10 = vrot.slane %v891_v5, 1  ;;  %v898_v13 = vrot.slane %v896_v6, 1  ;;  %v912_v16 = vshll.u32 %v1877_v8, 16  ;;  %v359_v17 = vsel %vm307_vm1, %v354_v0, %v358_v59  ;;  %1211 = vperm.xlu0 %1851, %v1149_v34   ;;  %v1882_v0 = vld [vmem:[%s2074_s29 + $0x48] ss:$0 sps:$4 sm:$0x11]  }
  0x28   : > { %v368_v18 = vshrl.u32 %v2147_v52, 16  ;;  %v372_v19 = vshll.u32 %v1873_v60, 16  ;;  %v367_v20 = vsel %vm307_vm1, %v362_v1, %v366_v2  ;;  %v906_v22 = vrot.slane %v904_v7, 1  ;;  %1156 = vperm.xlu1 %1852, %v1138_v42  }
  0x29   : > { %v894_v21 = vor.u32 %v893_v10, %v889_v4  ;;  %v902_v24 = vor.u32 %v900_v9, %v898_v13  ;;  %v914_v29 = vrot.slane %v912_v16, 1  ;;  %v920_v35 = vshll.u32 %v1878_v23, 16 }
  0x2a   : > { %v910_v28 = vor.u32 %v908_v15, %v906_v22  ;;  %v370_v31 = vor.u32 %v368_v18, %v366_v2  ;;  %v374_v33 = vrot.slane %v372_v19, 1  ;;  %v916_v37 = vshrl.u32 %v1877_v8, 16 }
  0x2b   : > { %v899_v27 = vsel %vm307_vm1, %v894_v21, %v898_v13  ;;  %v907_v36 = vsel %vm307_vm1, %v902_v24, %v906_v22  ;;  %v924_v40 = vshrl.u32 %v1878_v23, 16  ;;  %v928_v41 = vshll.u32 %v1879_v26, 16  ;;  %1226 = vperm.xlu0 %1851, %v1152_v38   ;;  %v2250_v24 = vld [vmem:[%s2415_s2] ss:$0 sm:$0xff] }
  0x2c   : > { %1678 = vmatmul.mubr.msk.bf16.gmra.mrb[4].mxu1 %vm382_vm0, %v343_v54  ;;  %v915_v39 = vsel %vm307_vm1, %v910_v28, %v914_v29  ;;  %v375_v43 = vsel %vm307_vm1, %v370_v31, %v374_v33  ;;  %v922_v45 = vrot.slane %v920_v35, 1  ;;  %v918_v48 = vor.u32 %v916_v37, %v914_v29  ;;  %v1146_v54 = vld [vmem:[%s2416_s3 + $0x40] sm:$0xff] }
  0x2d   : > { %1718 = vmatmul.mubr.msk.bf16.gmra.mrb[8].mxu0 %vm382_vm0, %v1867_v47  ;;  %1681 = vmatprep.mubr.msk.bf16.mxu1 %vm382_vm0, %v351_v58  ;;  %v1880_v47 = vld [vmem:[%s2074_s29 + $0x38] sm:$0xff]   ;;  %v930_v51 = vrot.slane %v928_v41, 1  ;;  %v932_v57 = vshrl.u32 %v1879_v26, 16  ;;  %v1150_v58 = vld [vmem:[%s2416_s3 + $0x60] sm:$0xff]  ;;  %v944_v61 = vshll.u32 %v1881_v53, 16  ;;  %v948_v4 = vshrl.u32 %v1881_v53, 16 }
  0x2e   : > { %1721 = vmatprep.mubr.msk.bf16.mxu0 %vm382_vm0, %v1870_v50  ;;  %v926_v50 = vor.u32 %v924_v40, %v922_v45  ;;  %v936_v55 = vshll.u32 %v1880_v47, 16  ;;  %v923_v56 = vsel %vm307_vm1, %v918_v48, %v922_v45  ;;  %1196 = vperm.xlu1 %1852, %v1146_v54   ;;  %v940_v60 = vshrl.u32 %v1880_v47, 16 }
  0x2f   : > { %1176 = vperm.xlu0 %1851, %v1142_v49   ;;  %v934_v63 = vor.u32 %v932_v57, %v930_v51  ;;  %v946_v2 = vrot.slane %v944_v61, 1  ;;  %v952_v5 = vshll.u32 %v1882_v0, 16 }
  0x30   : > { %v931_v59 = vsel %vm307_vm1, %v926_v50, %v930_v51 }
  0x31   : > { %v950_v7 = vor.u32 %v948_v4, %v946_v2  ;;  %v954_v8 = vrot.slane %v952_v5, 1 }
  0x32   : > { %1231 = vperm.xlu1 %1852, %v1153_v62  }
  0x33   : > { %1216 = vperm.xlu0 %1851, %v1150_v58  }
  0x34   : > { %1682 = vmatmul.mubr.msk.bf16.gmra.mrb[8].mxu1 %vm382_vm0, %v359_v17 }
  0x35   : > { %1722 = vmatmul.mubr.msk.bf16.gmra.mrb[12].mxu0 %vm382_vm0, %v1871_v3  ;;  %1685 = vmatprep.mubr.msk.bf16.mxu1 %vm382_vm0, %v367_v20 }
  0x36   : > { %1727 = vmatprep.mubr.msk.bf16.mxu0 %vm382_vm0, %v899_v27 }
  0x3c   : > { %1686 = vmatmul.mubr.msk.bf16.gmra.mrb[12].mxu1 %vm382_vm0, %v375_v43 }
  0x3d   : > { %1728 = vmatmul.mubr.msk.bf16.vlgmr.msra.gmra.mrb[0].mxu0 %vm382_vm0, %v907_v36  ;;  %1691 = vmatprep.mubr.msk.bf16.mxu1 %vm382_vm0, %v2087_v11  ;;  %v938_v11 = vrot.slane %v936_v55, 1 }
  0x3e   : > { %1731 = vmatprep.mubr.msk.bf16.mxu0 %vm382_vm0, %v915_v39 }
  0x3f   : > { %v942_v1 = vor.u32 %v940_v60, %v938_v11  ;;  %v939_v3 = vsel %vm307_vm1, %v934_v63, %v938_v11 }
  0x41   : > { %v947_v6 = vsel %vm307_vm1, %v942_v1, %v946_v2 }
  0x44   : > { %1692 = vmatmul.mubr.msk.bf16.vlgmr.msra.gmra.mrb[0].mxu1 %vm382_vm0, %v2090_v12  ;;  %v955_v12 = vsel %vm307_vm1, %v950_v7, %v954_v8 }
  0x45   : > { %1732 = vmatmul.mubr.msk.bf16.gmra.mrb[4].mxu0 %vm382_vm0, %v923_v56  ;;  %1695 = vmatprep.mubr.msk.bf16.mxu1 %vm382_vm0, %v2096_v14  ;;  %v1964_v14 = vmov 0.0  }
  0x46   : > { %1735 = vmatprep.mubr.msk.bf16.mxu0 %vm382_vm0, %v931_v59  ;;  %1250 = vst [vmem:[#allocation2] sm:$0xff] %v1964_v14  ;;  %1251 = vst [vmem:[#allocation2 + $0x8] sm:$0xff] %v1964_v14 }
  0x47   : > { %1252 = vst [vmem:[#allocation2 + $0x10] sm:$0x1] %v1964_v14  ;;  %1253 = vst [vmem:[#allocation2 + $0x91] sm:$0xff] %v1964_v14 }
  0x4c   : > { %1696 = vmatmul.mubr.msk.bf16.gmra.mrb[4].mxu1 %vm382_vm0, %v2109_v25 }
  0x4d   : > { %1736 = vmatmul.mubr.msk.bf16.gmra.mrb[8].mxu0 %vm382_vm0, %v939_v3  ;;  %1699 = vmatprep.mubr.msk.bf16.mxu1 %vm382_vm0, %v2118_v32  ;;  %v1272_v48 = vld [vmem:[#allocation2 + $0x1] sm:$0xff] }
  0x4e   : > { %1739 = vmatprep.mubr.msk.bf16.mxu0 %vm382_vm0, %v947_v6  ;;  %v1273_v57 = vld [vmem:[#allocation2 + $0x9] sm:$0xff] }
  0x54   : > { %1700 = vmatmul.mubr.msk.bf16.gmra.mrb[8].mxu1 %vm382_vm0, %v2135_v44 }
  0x55   : > { %1740 = vmatmul.mubr.msk.bf16.gmra.mrb[12].mxu0 %vm382_vm0, %v955_v12  ;;  %1703 = vmatprep.mubr.msk.bf16.mxu1 %vm382_vm0, %v2140_v46 }
  0x5c   : > { %1704 = vmatmul.mubr.msk.bf16.gmra.mrb[12].mxu1 %vm382_vm0, %v2147_v52 }
  0x92   : > { %v2233_v25 = vpop.permute.xlu1 %1181  ;;  %v1162_v32 = vpop.permute.xlu0 %1161 }
  0x96   : > { %v2235_v9 = vpop.permute.xlu1 %1186  ;;  %v1167_v10 = vpop.permute.xlu0 %1166 }
  0x9a   : > { %v2237_v13 = vpop.permute.xlu1 %1206  ;;  %v2239_v44 = vpop.permute.xlu0 %1201 }
  0x9e   : > { %v2241_v16 = vpop.permute.xlu1 %1191  ;;  %v1172_v17 = vpop.permute.xlu0 %1171 }
  0xa3   : > { %v2243_v19 = vpop.permute.xlu1 %1221 }
  0xa6   : > { %v2245_v21 = vpop.permute.xlu0 %1211 }
  0xa7   : > { %v1157_v45 = vpop.permute.xlu1 %1156 }
  0xaa   : > { %v2255_v40 = vpop.permute.xlu0 %1226 }
 0x110   : > { %v1729_v15 = vpop.f32.mrb[0].mxu0 }
 0x111   : > { %v1020_v46 = vpop.f32.mrb[1].mxu0 }
 0x112   : > { %v1730_v52 = vpop.f32.mrb[2].mxu0 }
 0x113   : > { %v1023_v18 = vpop.f32.mrb[3].mxu0 }
 0x117   : > { %v1693_v23 = vpop.f32.mrb[0].mxu1 }
 0x118   : > { %v1733_v20 = vpop.f32.mrb[4].mxu0  ;;  %v1743_v27 = vadd.f32 %v1729_v15, %v1693_v23  ;;  %v560_v28 = vpop.f32.mrb[1].mxu1 }
 0x119   : > { %v1036_v22 = vpop.f32.mrb[5].mxu0  ;;  %v1744_v30 = vadd.f32 %v1020_v46, %v560_v28  ;;  %v1694_v31 = vpop.f32.mrb[2].mxu1 }
 0x11a   : > { %v1734_v26 = vpop.f32.mrb[6].mxu0  ;;  %v1108_v33 = vadd.f32 %v1743_v27, %v2250_v24  ;;  %v1745_v34 = vadd.f32 %v1730_v52, %v1694_v31  ;;  %v563_v35 = vpop.f32.mrb[3].mxu1 }
 0x11b   : > { %v1039_v29 = vpop.f32.mrb[7].mxu0  ;;  %v1106_v36 = vadd.f32 %v1744_v30, %v2250_v24  ;;  %v1746_v37 = vadd.f32 %v1023_v18, %v563_v35  ;;  %v1177_v46 = vpop.permute.xlu0 %1176 }
 0x11c   : > { %v1124_v38 = vmax.f32 %v1108_v33, 0.0  ;;  %v1109_v39 = vadd.f32 %v1745_v34, %v2250_v24 }
 0x11d   : > { %v1122_v41 = vmax.f32 %v1106_v36, 0.0  ;;  %v1107_v42 = vadd.f32 %v1746_v37, %v2250_v24 }
 0x11e   : > { %v1236_v47 = vmul.f32 %v1167_v10, %v1124_v38  ;;  %v1125_v49 = vmax.f32 %v1109_v39, 0.0 }
 0x11f   : > { %v1234_v51 = vmul.f32 %v1157_v45, %v1122_v41  ;;  %v1123_v53 = vmax.f32 %v1107_v42, 0.0  ;;  %v1697_v54 = vpop.f32.mrb[4].mxu1 }
 0x120   : > { %v1737_v43 = vpop.f32.mrb[8].mxu0  ;;  %v2258_v56 = vmul.f32 %v1172_v17, %v1125_v49  ;;  %v1747_v58 = vadd.f32 %v1733_v20, %v1697_v54  ;;  %v576_v59 = vpop.f32.mrb[5].mxu1 }
 0x121   : > { %v1052_v50 = vpop.f32.mrb[9].mxu0  ;;  %v1288_v61 = vmax.f32 %v1272_v48, %v1234_v51  ;;  %v1290_v62 = vmax.f32 %v1234_v51, %v1236_v47  ;;  %v1235_v11 = vmul.f32 %v1162_v32, %v1123_v53  ;;  %v1748_v63 = vadd.f32 %v1036_v22, %v576_v59  ;;  %v1698_v0 = vpop.f32.mrb[6].mxu1 }
 0x122   : > { %v1738_v55 = vpop.f32.mrb[10].mxu0  ;;  %v1112_v1 = vadd.f32 %v1747_v58, %v2250_v24  ;;  %v1749_v2 = vadd.f32 %v1734_v26, %v1698_v0  ;;  %v579_v3 = vpop.f32.mrb[7].mxu1 }
 0x123   : > { %v1055_v60 = vpop.f32.mrb[11].mxu0  ;;  %v1308_v4 = vmax.f32 %v1288_v61, %v1236_v47  ;;  %v1289_v5 = vmax.f32 %v1273_v57, %v1235_v11  ;;  %v1291_v6 = vmax.f32 %v1235_v11, %v2258_v56  ;;  %v1110_v7 = vadd.f32 %v1748_v63, %v2250_v24 }
 0x124   : > { %v1128_v8 = vmax.f32 %v1112_v1, 0.0  ;;  %v1113_v12 = vadd.f32 %v1749_v2, %v2250_v24  ;;  %v1750_v14 = vadd.f32 %v1039_v29, %v579_v3 }
 0x125   : > { %1324 = vst [vmem:[#allocation2 + $0x11] sm:$0xff] %v1308_v4  ;;  %v2265_v10 = vmax.f32 %v1289_v5, %v2258_v56  ;;  %v1126_v32 = vmax.f32 %v1110_v7, 0.0 }
 0x126   : > { %v2268_v52 = vmul.f32 %v2235_v9, %v1128_v8  ;;  %v1129_v17 = vmax.f32 %v1113_v12, 0.0  ;;  %v1111_v18 = vadd.f32 %v1750_v14, %v2250_v24 }
 0x127   : > { %1325 = vst [vmem:[#allocation2 + $0x19] sm:$0xff] %v2265_v10  ;;  %v1238_v22 = vmul.f32 %v1177_v46, %v1126_v32  ;;  %v1701_v23 = vpop.f32.mrb[8].mxu1 }
 0x128   : > { %v1741_v15 = vpop.f32.mrb[12].mxu0  ;;  %v2273_v27 = vmul.f32 %v2241_v16, %v1129_v17  ;;  %v1127_v28 = vmax.f32 %v1111_v18, 0.0  ;;  %v1751_v29 = vadd.f32 %v1737_v43, %v1701_v23  ;;  %v592_v30 = vpop.f32.mrb[9].mxu1 }
 0x129   : > { %v1068_v20 = vpop.f32.mrb[13].mxu0  ;;  %v1292_v33 = vmax.f32 %v1236_v47, %v1238_v22  ;;  %v1294_v9 = vmax.f32 %v1238_v22, %v2268_v52  ;;  %v2276_v34 = vmax.f32 %v1290_v62, %v1238_v22  ;;  %v1752_v35 = vadd.f32 %v1052_v50, %v592_v30  ;;  %v1702_v36 = vpop.f32.mrb[10].mxu1 }
 0x12a   : > { %v1742_v26 = vpop.f32.mrb[14].mxu0  ;;  %v1239_v37 = vmul.f32 %v2233_v25, %v1127_v28  ;;  %v1116_v38 = vadd.f32 %v1751_v29, %v2250_v24  ;;  %v1753_v39 = vadd.f32 %v1738_v55, %v1702_v36  ;;  %v595_v41 = vpop.f32.mrb[11].mxu1 }
 0x12b   : > { %v1071_v31 = vpop.f32.mrb[15].mxu0  ;;  %v2281_v16 = vmax.f32 %v1292_v33, %v2268_v52  ;;  %1326 = vst [vmem:[#allocation2 + $0x21] sm:$0xff] %v2276_v34  ;;  %v1114_v42 = vadd.f32 %v1752_v35, %v2250_v24  ;;  %v1754_v43 = vadd.f32 %v1055_v60, %v595_v41  ;;  %v1197_v55 = vpop.permute.xlu1 %1196 }
 0x12c   : > { %v1340_v45 = vld [vmem:[#allocation2 + $0x10] sm:$0xff]  ;;  %v1293_v47 = vmax.f32 %v2258_v56, %v1239_v37  ;;  %v1295_v48 = vmax.f32 %v1239_v37, %v2273_v27  ;;  %v2287_v49 = vmax.f32 %v1291_v6, %v1239_v37  ;;  %v1132_v25 = vmax.f32 %v1116_v38, 0.0 }
 0x12d   : > { %v1356_v50 = vmax.f32 %v1340_v45, %v1308_v4  ;;  %1328 = vst [vmem:[#allocation2 + $0x31] sm:$0xff] %v2281_v16  ;;  %v1130_v51 = vmax.f32 %v1114_v42, 0.0  ;;  %v1117_v53 = vadd.f32 %v1753_v39, %v2250_v24  ;;  %v1115_v54 = vadd.f32 %v1754_v43, %v2250_v24 }
 0x12e   : > { %v1341_v57 = vld [vmem:[#allocation2 + $0x18] sm:$0xff]  ;;  %v2293_v59 = vmax.f32 %v1293_v47, %v2273_v27  ;;  %1327 = vst [vmem:[#allocation2 + $0x29] sm:$0xff] %v2287_v49  ;;  %v2297_v56 = vmul.f32 %v2237_v13, %v1132_v25 }
 0x12f   : > { %v1372_v58 = vld [vmem:[#allocation2 + $0x12] sm:$0xff]  ;;  %v2299_v61 = vmul.f32 %v1197_v55, %v1130_v51  ;;  %v1133_v62 = vmax.f32 %v1117_v53, 0.0  ;;  %v1705_v11 = vpop.f32.mrb[12].mxu1  ;;  %v1357_v63 = vmax.f32 %v1341_v57, %v2265_v10  ;;  %v1131_v0 = vmax.f32 %v1115_v54, 0.0  ;;  %v1232_v43 = vpop.permute.xlu1 %1231 }
 0x130   : > { %v1388_v60 = vmax.f32 %v1356_v50, %v1372_v58  ;;  %1329 = vst [vmem:[#allocation2 + $0x39] sm:$0xff] %v2293_v59  ;;  %v1755_v1 = vadd.f32 %v1741_v15, %v1705_v11  ;;  %v608_v2 = vpop.f32.mrb[13].mxu1 }
 0x131   : > { %v1296_v3 = vmax.f32 %v2268_v52, %v2299_v61  ;;  %v1298_v13 = vmax.f32 %v2299_v61, %v2297_v56  ;;  %v2309_v4 = vmax.f32 %v1294_v9, %v2299_v61  ;;  %v2312_v5 = vmul.f32 %v2245_v21, %v1133_v62  ;;  %v1706_v6 = vpop.f32.mrb[14].mxu1 }
 0x132   : > { %1404 = vst [vmem:[#allocation2] sm:$0xff] %v1388_v60  ;;  %v1342_v7 = vld [vmem:[#allocation2 + $0x20] sm:$0xff]  ;;  %v1243_v12 = vmul.f32 %v2239_v44, %v1131_v0  ;;  %v1120_v14 = vadd.f32 %v1755_v1, %v2250_v24  ;;  %v1756_v10 = vadd.f32 %v1068_v20, %v608_v2  ;;  %v1757_v32 = vadd.f32 %v1742_v26, %v1706_v6  ;;  %v611_v15 = vpop.f32.mrb[15].mxu1 }
 0x133   : > { %v1373_v8 = vld [vmem:[#allocation2 + $0x1a] sm:$0xff]  ;;  %v1358_v46 = vmax.f32 %v1342_v7, %v2276_v34  ;;  %v2318_v17 = vmax.f32 %v1296_v3, %v2297_v56  ;;  %1330 = vst [vmem:[#allocation2 + $0x41] sm:$0xff] %v2309_v4  ;;  %v1758_v21 = vadd.f32 %v1071_v31, %v611_v15 }
 0x134   : > { %v1389_v52 = vmax.f32 %v1357_v63, %v1373_v8  ;;  %v1297_v18 = vmax.f32 %v2273_v27, %v1243_v12  ;;  %v1299_v44 = vmax.f32 %v1243_v12, %v2312_v5  ;;  %v2327_v22 = vmax.f32 %v1295_v48, %v1243_v12 }
 0x135   : > { %v1136_v20 = vmax.f32 %v1120_v14, 0.0  ;;  %v1343_v23 = vld [vmem:[#allocation2 + $0x28] sm:$0xff]  ;;  %v1344_v26 = vld [vmem:[#allocation2 + $0x30] sm:$0xff]  ;;  %1332 = vst [vmem:[#allocation2 + $0x51] sm:$0xff] %v2318_v17  ;;  %v1118_v29 = vadd.f32 %v1756_v10, %v2250_v24  ;;  %v1121_v30 = vadd.f32 %v1757_v32, %v2250_v24  ;;  %v1119_v31 = vadd.f32 %v1758_v21, %v2250_v24  ;;  %v1217_v24 = vpop.permute.xlu0 %1216 }
 0x136   : > { %v1374_v28 = vld [vmem:[#allocation2 + $0x22] sm:$0xff]  ;;  %1405 = vst [vmem:[#allocation2 + $0x8] sm:$0xff] %v1389_v52  ;;  %v1359_v33 = vmax.f32 %v1343_v23, %v2287_v49  ;;  %v1360_v27 = vmax.f32 %v1344_v26, %v2281_v16  ;;  %v2336_v34 = vmax.f32 %v1297_v18, %v2312_v5  ;;  %1331 = vst [vmem:[#allocation2 + $0x49] sm:$0xff] %v2327_v22  ;;  %v1375_v36 = vld [vmem:[#allocation2 + $0x2a] sm:$0xff] }
 0x137   : > { %v1390_v9 = vmax.f32 %v1358_v46, %v1374_v28  ;;  %v1345_v35 = vld [vmem:[#allocation2 + $0x38] sm:$0xff]  ;;  %v1248_v38 = vmul.f32 %v2255_v40, %v1136_v20  ;;  %v1134_v39 = vmax.f32 %v1118_v29, 0.0  ;;  %v1137_v41 = vmax.f32 %v1121_v30, 0.0 }
 0x138   : > { %v1376_v37 = vld [vmem:[#allocation2 + $0x32] sm:$0xff]  ;;  %v1135_v42 = vmax.f32 %v1119_v31, 0.0  ;;  %v1391_v45 = vmax.f32 %v1359_v33, %v1375_v36  ;;  %1333 = vst [vmem:[#allocation2 + $0x59] sm:$0xff] %v2336_v34  ;;  %v1361_v48 = vmax.f32 %v1345_v35, %v2293_v59 }
 0x139   : > { %v1392_v47 = vmax.f32 %v1360_v27, %v1376_v37  ;;  %1406 = vst [vmem:[#allocation2 + $0x10] sm:$0xff] %v1390_v9  ;;  %v1420_v16 = vld [vmem:[#allocation2] ss:$2 sm:$0xf]  ;;  %v1246_v49 = vmul.f32 %v1217_v24, %v1134_v39  ;;  %v1249_v25 = vmul.f32 %v1232_v43, %v1137_v41 }
 0x13a   : > { %v1247_v50 = vmul.f32 %v2243_v19, %v1135_v42  ;;  %1421 = vst [vmem:[%s2344_s5] sm:$0xf] %v1420_v16  ;;  %1407 = vst [vmem:[#allocation2 + $0x18] sm:$0xff] %v1391_v45  ;;  %v1346_v40 = vld [vmem:[#allocation2 + $0x40] sm:$0xff] }
 0x13b   : > { %1408 = vst [vmem:[#allocation2 + $0x20] sm:$0xff] %v1392_v47  ;;  %v1377_v51 = vld [vmem:[#allocation2 + $0x3a] sm:$0xff]  ;;  %v1362_v53 = vmax.f32 %v1346_v40, %v2309_v4  ;;  %v1300_v55 = vmax.f32 %v2297_v56, %v1246_v49  ;;  %v1302_v57 = vmax.f32 %v1246_v49, %v1248_v38  ;;  %v1318_v58 = vmax.f32 %v1298_v13, %v1246_v49 }
 0x13c   : > { %v1393_v54 = vmax.f32 %v1361_v48, %v1377_v51  ;;  %v1301_v59 = vmax.f32 %v2312_v5, %v1247_v50  ;;  %v1303_v60 = vmax.f32 %v1247_v50, %v1249_v25  ;;  %v1319_v61 = vmax.f32 %v1299_v44, %v1247_v50 }
 0x13d   : > { %v1347_v19 = vld [vmem:[#allocation2 + $0x48] sm:$0xff]  ;;  %v1348_v62 = vld [vmem:[#allocation2 + $0x50] sm:$0xff]  ;;  %v1320_v63 = vmax.f32 %v1300_v55, %v1248_v38  ;;  %v1322_v0 = vmax.f32 %v1302_v57, 0.0  ;;  %1334 = vst [vmem:[#allocation2 + $0x61] sm:$0xff] %v1318_v58 }
 0x13e   : > { %v1378_v11 = vld [vmem:[#allocation2 + $0x42] sm:$0xff]  ;;  %1409 = vst [vmem:[#allocation2 + $0x28] sm:$0xff] %v1393_v54  ;;  %v1363_v1 = vmax.f32 %v1347_v19, %v2327_v22  ;;  %v1364_v2 = vmax.f32 %v1348_v62, %v2318_v17  ;;  %v1321_v4 = vmax.f32 %v1301_v59, %v1249_v25  ;;  %1335 = vst [vmem:[#allocation2 + $0x69] sm:$0xff] %v1319_v61  ;;  %v1379_v56 = vld [vmem:[#allocation2 + $0x4a] sm:$0xff]  ;;  %v1323_v5 = vmax.f32 %v1303_v60, 0.0 }
 0x13f   : > { %v1394_v3 = vmax.f32 %v1362_v53, %v1378_v11  ;;  %v1380_v13 = vld [vmem:[#allocation2 + $0x52] sm:$0xff]  ;;  %1336 = vst [vmem:[#allocation2 + $0x71] sm:$0xff] %v1320_v63  ;;  %1338 = vst [vmem:[#allocation2 + $0x81] sm:$0xff] %v1322_v0 }
 0x140   : > { %v1395_v6 = vmax.f32 %v1363_v1, %v1379_v56  ;;  %v1396_v7 = vmax.f32 %v1364_v2, %v1380_v13  ;;  %1337 = vst [vmem:[#allocation2 + $0x79] sm:$0xff] %v1321_v4  ;;  %v1349_v8 = vld [vmem:[#allocation2 + $0x58] sm:$0xff]  ;;  %1339 = vst [vmem:[#allocation2 + $0x89] sm:$0xff] %v1323_v5 }
 0x141   : > { %1410 = vst [vmem:[#allocation2 + $0x30] sm:$0xff] %v1394_v3  ;;  %v1365_v14 = vmax.f32 %v1349_v8, %v2336_v34 }
 0x142   : > { %v1423_v12 = vld [vmem:[#allocation2 + $0x20] ss:$2 sm:$0xf]  ;;  %1411 = vst [vmem:[#allocation2 + $0x38] sm:$0xff] %v1395_v6  ;;  %1412 = vst [vmem:[#allocation2 + $0x40] sm:$0xff] %v1396_v7 }
 0x143   : > { %1626 = vst [vmem:[%s2344_s5 + $0x4] sm:$0xf] %v1423_v12 }
 0x144   : > { %v1350_v10 = vld [vmem:[#allocation2 + $0x60] sm:$0xff] }
 0x145   : > { %v1351_v32 = vld [vmem:[#allocation2 + $0x68] sm:$0xff]  ;;  %v1381_v15 = vld [vmem:[#allocation2 + $0x5a] sm:$0xff]  ;;  %v1366_v46 = vmax.f32 %v1350_v10, %v1318_v58 }
 0x146   : > { %v1352_v52 = vld [vmem:[#allocation2 + $0x70] sm:$0xff]  ;;  %v1367_v17 = vmax.f32 %v1351_v32, %v1319_v61  ;;  %v1382_v21 = vld [vmem:[#allocation2 + $0x62] sm:$0xff]  ;;  %v1397_v44 = vmax.f32 %v1365_v14, %v1381_v15 }
 0x147   : > { %v1383_v18 = vld [vmem:[#allocation2 + $0x6a] sm:$0xff]  ;;  %v1353_v22 = vld [vmem:[#allocation2 + $0x78] sm:$0xff]  ;;  %v1354_v20 = vld [vmem:[#allocation2 + $0x80] sm:$0xff]  ;;  %v1368_v23 = vmax.f32 %v1352_v52, %v1320_v63  ;;  %v1398_v31 = vmax.f32 %v1366_v46, %v1382_v21 }
 0x148   : > { %v1384_v26 = vld [vmem:[#allocation2 + $0x72] sm:$0xff]  ;;  %v1355_v28 = vld [vmem:[#allocation2 + $0x88] sm:$0xff]  ;;  %v1369_v29 = vmax.f32 %v1353_v22, %v1321_v4  ;;  %v1370_v30 = vmax.f32 %v1354_v20, %v1322_v0  ;;  %v1399_v33 = vmax.f32 %v1367_v17, %v1383_v18  ;;  %1413 = vst [vmem:[#allocation2 + $0x48] sm:$0xff] %v1397_v44  ;;  %v1385_v9 = vld [vmem:[#allocation2 + $0x7a] sm:$0xff] }
 0x149   : > { %v1371_v27 = vmax.f32 %v1355_v28, %v1323_v5  ;;  %v1386_v34 = vld [vmem:[#allocation2 + $0x82] sm:$0xff]  ;;  %v1400_v35 = vmax.f32 %v1368_v23, %v1384_v26  ;;  %v1387_v37 = vld [vmem:[#allocation2 + $0x8a] sm:$0xff]  ;;  %1414 = vst [vmem:[#allocation2 + $0x50] sm:$0xff] %v1398_v31 }
 0x14a   : > { %v1427_v36 = vld [vmem:[#allocation2 + $0x40] ss:$2 sm:$0xf]  ;;  %v1401_v38 = vmax.f32 %v1369_v29, %v1385_v9  ;;  %v1402_v39 = vmax.f32 %v1370_v30, %v1386_v34  ;;  %1415 = vst [vmem:[#allocation2 + $0x58] sm:$0xff] %v1399_v33 }
 0x14b   : > { %1627 = vst [vmem:[%s2344_s5 + $0x8] sm:$0xf] %v1427_v36  ;;  %v1403_v41 = vmax.f32 %v1371_v27, %v1387_v37  ;;  %1416 = vst [vmem:[#allocation2 + $0x60] sm:$0xff] %v1400_v35 }
 0x14c   : > { %1417 = vst [vmem:[#allocation2 + $0x68] sm:$0xff] %v1401_v38  ;;  %1418 = vst [vmem:[#allocation2 + $0x70] sm:$0xff] %v1402_v39 }
 0x14d   : > { %1419 = vst [vmem:[#allocation2 + $0x78] sm:$0xff] %v1403_v41 }
 0x152   : > { %v1431_v42 = vld [vmem:[#allocation2 + $0x60] ss:$2 sm:$0xf] }
 0x153   : > { %1628 = vst [vmem:[%s2344_s5 + $0xc] sm:$0xf] %v1431_v42 }
 0x154   : > { %1896 = shalt.err (!%p1893_p5)
}
 0x155   : > { %s1897_s21 = scalar_lea.hbm %s2360_s10, 256  ;;  %s1901_s24 = scalar_lea.hbm %s2417_s4, 512 }
 0x156   : > { %p1898_p6 = scmp.ne.s32.totalorder %s2360_s10, %s1897_s21  ;;  %p1902_p10 = scmp.lt.u32.totalorder %s2360_s10, %s2417_s4 }
 0x157   : > { %p1903_p11 = scmp.lt.u32.totalorder %s1901_s24, %s1897_s21  ;;  %p1905_p13 = scmp.lt.u32.totalorder %s1897_s21, %s2360_s10 }
 0x158   : > { %p1899_p7 = pnand %p1898_p6, %p2033_p4 }
 0x159   : > { %p1904_p12 = por %p1903_p11, %p1902_p10 }
 0x15a   : > { %p1900_p9 = pneg %p1899_p7 }
 0x15b   : > { %p1906_p0 = por %p1905_p13, %p1904_p12 }
 0x15d   : > { %p1907_p1 = pnand %p1906_p0, %p1900_p9 }
 0x15f   : > { %1910 = shalt.err (!%p1907_p1)
}
 0x160   : > { %s1966_s5 = smov 64   ;;  %s1967_s6 = smov 4  }
 0x161   : > { %1792 = dma.vmem_to_hbm [thread:$0]  (%p2033_p4), %s2362_s7, 256, %s2360_s10, %s2367_s11, %s1966_s5, %s1966_s5, %s1967_s6  }
 0x162 PF: > { %p1798_p2 = scmp.ge.s32.totalorder %s1961_s20, 2  ;;  %s1464_s8 = sand.u32 1, %s1941_s15  }
 0x163   : > { %s1465_s9 = scalar_lea.sflag [#allocation4], %s1464_s8 }
 0x164   : > { %p1795_p3 = pnand %p1798_p2, %p2040_p8 }
 0x166   : > { %1936 = dma.done.wait (!%p1795_p3), %s1465_s9, 256  }
 0x167   : > { %1938 = vsyncadd (!%p1795_p3), %s1465_s9, 4294967040  ;;  %s17_s20 = sadd.s32 1, %s1961_s20   ;;  %s2420_s15 = smov %s1945_s16 }
 0x168   : > { %p14_p5 = scmp.ge.s32.totalorder %s17_s20, 4   ;;  %s2421_s16 = smov %s1949_s17 }
 0x169   : > { %s2422_s17 = smov %s2046_s28  ;;  %s2423_s18 = smov %s1957_s19 }
 0x16a   : > { %s2424_s19 = smov %s2426_s23  ;;  %16 = sbr.rel (!%p14_p5) target bundleno = 4 (0x4), region = 86 }
 0x171   :  { %1470 = vsyncpa [#allocation4], 1 }
 0x172   :  { %1472 = vsyncpa [#allocation4 + $0x1], 1 }

</bundles_post_ra>
